<compile_context>
chip_gen: v6e
topology: v6e:2x2x1
jax: 0.10.0
libtpu: 0.0.40
codegen_flags: <defaults>
</compile_context>

<pallas_src>
import functools
from typing import NamedTuple

import jax
import jax.numpy as jnp
from jax import lax
from jax.experimental import pallas as pl
from jax.experimental.pallas import tpu as pltpu

LN_EPS = 1e-6  # ieps_ln_default in the source repo (PyTorch LayerNorm default is 1e-5)


def _round_up(a: int, m: int) -> int:
    return ((a + m - 1) // m) * m


class LSTMStdFFNParams(NamedTuple):
    wx: jax.Array    # (d_pad, 3*d_pad)  matmul dtype (bf16 by default)
    wh: jax.Array    # (d_pad, 3*d_pad)
    vec: jax.Array   # (3, 3*d_pad) f32 : rows = bias, ln_gamma, ln_beta
    d: int           # true feature width D
    d_pad: int       # lane-padded feature width (multiple of 128)


def prepare_lstm_stdffn_params(weight, bias=None, ln_gamma=None, ln_beta=None, *,
                               matmul_dtype=jnp.bfloat16, lane_multiple=128):
    """One-time parameter prep (call once, reuse every step).

    weight            : (3D, 2D)  PyTorch Linear weight (out_features, in_features)
    bias              : (3D,)   or None (Linear bias disabled)
    ln_gamma, ln_beta : (3, D)   or None (LayerNorm affine disabled)
    """
    three_d, two_d = weight.shape
    d = two_d // 2
    assert three_d == 3 * d and two_d == 2 * d, "weight must be (3D, 2D)"
    d_pad = _round_up(d, lane_multiple)

    wt = jnp.asarray(weight, jnp.float32).T                   # (2D, 3D)
    # 3D output columns are gate-major: col j -> (gate j // D, feature j % D).
    wx = wt[:d].reshape(d, 3, d)                               # x part
    wh = wt[d:].reshape(d, 3, d)                               # h part
    b = (jnp.zeros((3, d), jnp.float32) if bias is None
         else jnp.asarray(bias, jnp.float32).reshape(3, d))
    g = (jnp.ones((3, d), jnp.float32) if ln_gamma is None
         else jnp.asarray(ln_gamma, jnp.float32).reshape(3, d))
    be = (jnp.zeros((3, d), jnp.float32) if ln_beta is None
          else jnp.asarray(ln_beta, jnp.float32).reshape(3, d))

    if d_pad != d:
        pad = d_pad - d
        # Zero-pad input-feature rows and each gate's output block so gate slices stay
        # 128-aligned in-kernel and padded z lanes come out exactly zero.
        wx = jnp.pad(wx, ((0, pad), (0, 0), (0, pad)))
        wh = jnp.pad(wh, ((0, pad), (0, 0), (0, pad)))
        b = jnp.pad(b, ((0, 0), (0, pad)))
        g = jnp.pad(g, ((0, 0), (0, pad)))
        be = jnp.pad(be, ((0, 0), (0, pad)))

    vec = jnp.stack([b.reshape(3 * d_pad), g.reshape(3 * d_pad),
                     be.reshape(3 * d_pad)], axis=0)
    return LSTMStdFFNParams(
        wx=wx.reshape(d_pad, 3 * d_pad).astype(matmul_dtype),
        wh=wh.reshape(d_pad, 3 * d_pad).astype(matmul_dtype),
        vec=vec, d=d, d_pad=d_pad)


# ---------------------------------------------------------------------------
# Kernels
# ---------------------------------------------------------------------------

def _finalize(z, x32, c32, vec, hout_ref, cout_ref, *, d_valid, d_pad):
    """LayerNorm over the 3*d_valid valid features, sigmoid gates, cell update."""
    b, g, beta = vec[0:1, :], vec[1:2, :], vec[2:3, :]
    z = z + b
    inv_n = 1.0 / float(3 * d_valid)
    # Padded z lanes are exactly zero (zero weight columns / zero bias), so the raw
    # row moments already cover only the valid features -> no per-step lane mask.
    mean = jnp.sum(z, axis=-1, keepdims=True) * inv_n
    var = jnp.maximum(jnp.sum(z * z, axis=-1, keepdims=True) * inv_n - mean * mean, 0.0)
    y = (z - mean) * lax.rsqrt(var + LN_EPS) * g + beta
    gates = jax.nn.sigmoid(y)                       # EUP
    ig = gates[:, 0:d_pad]                          # 128-aligned static slices
    fg = gates[:, d_pad:2 * d_pad]
    og = gates[:, 2 * d_pad:3 * d_pad]
    c_new = fg * c32 + ig * x32
    h_new = og * c_new
    cout_ref[...] = c_new.astype(cout_ref.dtype)
    hout_ref[...] = h_new.astype(hout_ref.dtype)


def _lstm_kernel(x_ref, h_ref, c_ref, wx_ref, wh_ref, vec_ref, hout_ref, cout_ref,
                 *, d_valid, d_pad):
    """Single-K path: whole (d_pad, 3*d_pad) weights are VMEM-resident."""
    w_dtype = wx_ref.dtype
    z = jnp.dot(x_ref[...].astype(w_dtype), wx_ref[...],
                preferred_element_type=jnp.float32)
    z = z + jnp.dot(h_ref[...].astype(w_dtype), wh_ref[...],
                    preferred_element_type=jnp.float32)
    _finalize(z, x_ref[...].astype(jnp.float32), c_ref[...].astype(jnp.float32),
              vec_ref[...], hout_ref, cout_ref, d_valid=d_valid, d_pad=d_pad)


def _lstm_kernel_ktiled(xk_ref, hk_ref, x_ref, c_ref, wx_ref, wh_ref, vec_ref,
                        hout_ref, cout_ref, acc_ref, *, d_valid, d_pad):
    """K-tiled path: weights streamed in (tk, 3*d_pad) chunks, f32 accumulator."""
    k = pl.program_id(1)
    w_dtype = wx_ref.dtype

    @pl.when(k == 0)
    def _():
        acc_ref[...] = jnp.zeros_like(acc_ref)

    acc_ref[...] += (
        jnp.dot(xk_ref[...].astype(w_dtype), wx_ref[...],
                preferred_element_type=jnp.float32)
        + jnp.dot(hk_ref[...].astype(w_dtype), wh_ref[...],
                  preferred_element_type=jnp.float32))

    @pl.when(k == pl.num_programs(1) - 1)
    def _():
        _finalize(acc_ref[...], x_ref[...].astype(jnp.float32),
                  c_ref[...].astype(jnp.float32), vec_ref[...],
                  hout_ref, cout_ref, d_valid=d_valid, d_pad=d_pad)


# ---------------------------------------------------------------------------
# Tiling / VMEM budget
# ---------------------------------------------------------------------------

def _vmem_budget_bytes():
    """Generation-aware VMEM cap (~48 MiB on v7x, ~96 MiB on v5e/v6e)."""
    try:
        cap = int(pltpu.get_tpu_info().vmem_capacity_bytes)
    except Exception:
        cap = 64 * 1024 * 1024
    return max(16 * 1024 * 1024, int(0.75 * cap))


def _choose_tk(d_pad, w_itemsize, budget, force_k_tiles):
    if force_k_tiles is not None:
        assert d_pad % force_k_tiles == 0 and (d_pad // force_k_tiles) % 128 == 0
        return d_pad // force_k_tiles
    # Largest 128-multiple divisor of d_pad whose resident weight footprint
    # (wx + wh blocks, double-buffered) stays within ~half the VMEM budget.
    divisors = [c for c in range(128, d_pad + 1, 128) if d_pad % c == 0]
    for tk in sorted(divisors, reverse=True):
        if 2 * 2 * tk * 3 * d_pad * w_itemsize <= budget // 2:
            return tk
    return divisors[0]


def _choose_tb(batch, d_pad, tk, w_itemsize, act_itemsize, out_itemsize, budget):
    three = 3 * d_pad
    k_tiled = tk < d_pad
    resident = 2 * 2 * tk * three * w_itemsize + 2 * 3 * three * 4   # weights + vec
    avail = max(budget - resident, 2 * 1024 * 1024)

    target = 1024 if d_pad <= 256 else 512
    if batch < 2 * target:
        # Keep >=2 grid steps when possible so both v7x TensorCores get work.
        target = max(8, _round_up(pl.cdiv(batch, 2), 8)) if batch > 8 else 8

    def per_tile_bytes(tb):
        if k_tiled:
            act_in = 2 * 2 * tb * tk * act_itemsize + 2 * 2 * tb * d_pad * act_itemsize
        else:
            act_in = 3 * 2 * tb * d_pad * act_itemsize
        act_out = 2 * 2 * tb * d_pad * out_itemsize
        scratch = tb * three * 4 if k_tiled else 0
        temps = 4 * tb * three * 4                       # z / y / gates intermediates
        return act_in + act_out + scratch + temps

    tb = max(8, min(_round_up(target, 8), _round_up(batch, 8)))
    while tb > 8 and per_tile_bytes(tb) > avail:
        tb = max(8, _round_up(tb // 2, 8))
    return tb


# ---------------------------------------------------------------------------
# Wrapper
# ---------------------------------------------------------------------------

def lstm_cell4stdffn(x, h_prev, c_prev, params: LSTMStdFFNParams, *,
                     tb=None, h_dtype=None, padded_io=False, force_k_tiles=None):
    """One LSTMCell4StdFFN step.

    x / h_prev / c_prev : (..., D)      when padded_io=False
                          (..., d_pad)  when padded_io=True (padded lanes must be zero;
                                        outputs keep them zero, so state can be carried
                                        in the padded layout with no per-step copies).
    h_dtype             : optional output dtype for h (e.g. bf16); c keeps its dtype —
                          carry c in f32 to avoid per-step rounding of the cell state.
    Returns (h_new, c_new) with the same trailing width as the inputs.
    """
    d, d_pad = params.d, params.d_pad
    feat = d_pad if padded_io else d
    assert x.shape[-1] == feat and h_prev.shape == x.shape and c_prev.shape == x.shape
    lead_shape = x.shape[:-1]

    x2 = x.reshape(-1, feat)
    h2 = h_prev.reshape(-1, feat)
    c2 = c_prev.reshape(-1, feat)
    batch = x2.shape[0]

    if feat != d_pad:
        # Lane padding only when D % 128 != 0 and the caller did not keep padded state
        # (prefer padded_io=True to avoid this per-step copy).
        fpad = ((0, 0), (0, d_pad - feat))
        x2, h2, c2 = jnp.pad(x2, fpad), jnp.pad(h2, fpad), jnp.pad(c2, fpad)

    budget = _vmem_budget_bytes()
    w_isz = jnp.dtype(params.wx.dtype).itemsize
    act_isz = max(jnp.dtype(x2.dtype).itemsize, jnp.dtype(c2.dtype).itemsize)
    h_out_dtype = jnp.dtype(h_dtype) if h_dtype is not None else h_prev.dtype
    c_out_dtype = c_prev.dtype
    out_isz = max(jnp.dtype(h_out_dtype).itemsize, jnp.dtype(c_out_dtype).itemsize)

    tk = _choose_tk(d_pad, w_isz, budget, force_k_tiles)
    nk = d_pad // tk
    if tb is None:
        tb = _choose_tb(batch, d_pad, tk, w_isz, act_isz, out_isz, budget)
    tb = max(8, _round_up(int(tb), 8))
    nb = pl.cdiv(batch, tb)     # partial last block: OOB rows masked on writeback

    out_shape = (jax.ShapeDtypeStruct((batch, d_pad), h_out_dtype),
                 jax.ShapeDtypeStruct((batch, d_pad), c_out_dtype))

    if nk == 1:
        kernel = functools.partial(_lstm_kernel, d_valid=d, d_pad=d_pad)
        row = pl.BlockSpec((tb, d_pad), lambda i: (i, 0))
        wsp = pl.BlockSpec((d_pad, 3 * d_pad), lambda i: (0, 0))
        vsp = pl.BlockSpec((3, 3 * d_pad), lambda i: (0, 0))
        grid_spec = pltpu.PrefetchScalarGridSpec(
            num_scalar_prefetch=0, grid=(nb,),
            in_specs=[row, row, row, wsp, wsp, vsp],
            out_specs=[row, row])
        compiler_params = pltpu.CompilerParams(
            dimension_semantics=("parallel",), vmem_limit_bytes=budget)
        h_new, c_new = pl.pallas_call(
            kernel, out_shape=out_shape, grid_spec=grid_spec,
            compiler_params=compiler_params,
        )(x2, h2, c2, params.wx, params.wh, params.vec)
    else:
        kernel = functools.partial(_lstm_kernel_ktiled, d_valid=d, d_pad=d_pad)
        rowk = pl.BlockSpec((tb, tk), lambda i, k: (i, k))
        row = pl.BlockSpec((tb, d_pad), lambda i, k: (i, 0))
        wsp = pl.BlockSpec((tk, 3 * d_pad), lambda i, k: (k, 0))
        vsp = pl.BlockSpec((3, 3 * d_pad), lambda i, k: (0, 0))
        grid_spec = pltpu.PrefetchScalarGridSpec(
            num_scalar_prefetch=0, grid=(nb, nk),
            in_specs=[rowk, rowk, row, row, wsp, wsp, vsp],
            out_specs=[row, row],
            scratch_shapes=[pltpu.VMEM((tb, 3 * d_pad), jnp.float32)])
        compiler_params = pltpu.CompilerParams(
            dimension_semantics=("parallel", "arbitrary"), vmem_limit_bytes=budget)
        h_new, c_new = pl.pallas_call(
            kernel, out_shape=out_shape, grid_spec=grid_spec,
            compiler_params=compiler_params,
        )(x2, h2, x2, c2, params.wx, params.wh, params.vec)

    if not padded_io and d_pad != d:
        h_new, c_new = h_new[:, :d], c_new[:, :d]
    return (h_new.reshape(lead_shape + (feat,)),
            c_new.reshape(lead_shape + (feat,)))


# ---------------------------------------------------------------------------
# Reference + tests
# ---------------------------------------------------------------------------

def _reference(x, h_prev, c_prev, weight, bias, ln_gamma, ln_beta):
    """Pure-JAX (f32) reference mirroring the PyTorch forward."""
    icat = jnp.concatenate([x, h_prev], axis=-1)
    z = jnp.dot(icat, weight.T, precision=lax.Precision.HIGHEST) + bias
    b, d = x.shape
    z = z.reshape(b, 3, d)
    mean = z.mean(axis=(-2, -1), keepdims=True)
    var = ((z - mean) ** 2).mean(axis=(-2, -1), keepdims=True)
    y = (z - mean) / jnp.sqrt(var + LN_EPS) * ln_gamma + ln_beta
    gates = jax.nn.sigmoid(y)
    ig, fg, og = gates[:, 0], gates[:, 1], gates[:, 2]
    c_new = fg * c_prev + ig * x
    h_new = og * c_new
    return h_new, c_new


if __name__ == "__main__":
    key = jax.random.PRNGKey(0)

    def make_case(k, batch, d):
        kx, kh, kc, kw, kb = jax.random.split(k, 5)
        x = jax.random.normal(kx, (batch, d), jnp.float32)
        h = jax.random.normal(kh, (batch, d), jnp.float32)
        c = jax.random.normal(kc, (batch, d), jnp.float32)
        bound = 1.0 / ((2 * d) ** 0.5)       # PyTorch Linear default init range
        w = jax.random.uniform(kw, (3 * d, 2 * d), jnp.float32, -bound, bound)
        b = jax.random.uniform(kb, (3 * d,), jnp.float32, -bound, bound)
        g = jnp.ones((3, d), jnp.float32)
        be = jnp.zeros((3, d), jnp.float32)
        return x, h, c, w, b, g, be

    k1, k2, k3 = jax.random.split(key, 3)

    # 1) f32 matmuls, D % 128 != 0 (lane padding) and batch not a multiple of the
    #    tile (partial last block): tight semantic check.
    x, h, c, w, b, g, be = make_case(k1, 6, 32)
    h_ref, c_ref = _reference(x, h, c, w, b, g, be)
    p = prepare_lstm_stdffn_params(w, b, g, be, matmul_dtype=jnp.float32)
    h_o, c_o = lstm_cell4stdffn(x, h, c, p)
    jax.block_until_ready((h_o, c_o))
    assert jnp.allclose(h_o, h_ref, atol=1e-4, rtol=1e-4)
    assert jnp.allclose(c_o, c_ref, atol=1e-4, rtol=1e-4)

    # 2) Default bf16 matmuls, multi-step batch grid with a partial last block.
    x, h, c, w, b, g, be = make_case(k2, 40, 32)
    h_ref, c_ref = _reference(x, h, c, w, b, g, be)
    p = prepare_lstm_stdffn_params(w, b, g, be)
    h_o, c_o = lstm_cell4stdffn(x, h, c, p)
    jax.block_until_ready((h_o, c_o))
    assert jnp.allclose(h_o, h_ref, atol=5e-2, rtol=5e-2)
    assert jnp.allclose(c_o, c_ref, atol=5e-2, rtol=5e-2)

    # 3) K-tiled path (reduction grid axis + f32 accumulator), forced with nk=2.
    x, h, c, w, b, g, be = make_case(k3, 16, 256)
    h_ref, c_ref = _reference(x, h, c, w, b, g, be)
    p = prepare_lstm_stdffn_params(w, b, g, be, matmul_dtype=jnp.float32)
    h_o, c_o = lstm_cell4stdffn(x, h, c, p, force_k_tiles=2)
    jax.block_until_ready((h_o, c_o))
    assert jnp.allclose(h_o, h_ref, atol=2e-4, rtol=2e-4)
    assert jnp.allclose(c_o, c_ref, atol=2e-4, rtol=2e-4)

    print("KERNEL_OK")
</pallas_src>

<mosaic_0001>
module attributes {stable_mosaic.version = 11 : i64} {
  func.func @_lstm_kernel(%arg0: i32, %arg1: memref<8x128xf32, #tpu.memory_space<vmem>>, %arg2: memref<8x128xf32, #tpu.memory_space<vmem>>, %arg3: memref<8x128xf32, #tpu.memory_space<vmem>>, %arg4: memref<128x384xf32, #tpu.memory_space<vmem>>, %arg5: memref<128x384xf32, #tpu.memory_space<vmem>>, %arg6: memref<3x384xf32, #tpu.memory_space<vmem>>, %arg7: memref<8x128xf32, #tpu.memory_space<vmem>>, %arg8: memref<8x128xf32, #tpu.memory_space<vmem>>) attributes {dimension_semantics = [#tpu.dimension_semantics<parallel>], iteration_bounds = array<i64: 1>, scalar_prefetch = 0 : i64, scratch_operands = 0 : i64, tpu.core_type = #tpu.core_type<tc>, window_params = [{transform_indices = @transform_0, window_bounds = array<i64: 8, 128>}, {transform_indices = @transform_1, window_bounds = array<i64: 8, 128>}, {transform_indices = @transform_2, window_bounds = array<i64: 8, 128>}, {pipeline_mode = #tpu.pipeline_mode<synchronous>, transform_indices = @transform_3, window_bounds = array<i64: 128, 384>}, {pipeline_mode = #tpu.pipeline_mode<synchronous>, transform_indices = @transform_4, window_bounds = array<i64: 128, 384>}, {pipeline_mode = #tpu.pipeline_mode<synchronous>, transform_indices = @transform_5, window_bounds = array<i64: 3, 384>}, {transform_indices = @transform_6, window_bounds = array<i64: 8, 128>}, {transform_indices = @transform_7, window_bounds = array<i64: 8, 128>}]} {
    %c0 = arith.constant 0 : index
    %c0_0 = arith.constant 0 : index
    %0 = vector.load %arg1[%c0, %c0_0] : memref<8x128xf32, #tpu.memory_space<vmem>>, vector<8x128xf32>
    %c0_1 = arith.constant 0 : index
    %c0_2 = arith.constant 0 : index
    %1 = vector.load %arg4[%c0_1, %c0_2] : memref<128x384xf32, #tpu.memory_space<vmem>>, vector<128x384xf32>
    %cst = arith.constant dense<0.000000e+00> : vector<8x384xf32>
    %2 = tpu.matmul %0, %1, %cst {dimension_numbers = #tpu.dot_dimension_numbers<[1], [0], [0], [1], [0, 0, 1, 1], [], []>} : vector<8x128xf32>, vector<128x384xf32>, vector<8x384xf32> -> vector<8x384xf32>
    %c0_3 = arith.constant 0 : index
    %c0_4 = arith.constant 0 : index
    %3 = vector.load %arg2[%c0_3, %c0_4] : memref<8x128xf32, #tpu.memory_space<vmem>>, vector<8x128xf32>
    %c0_5 = arith.constant 0 : index
    %c0_6 = arith.constant 0 : index
    %4 = vector.load %arg5[%c0_5, %c0_6] : memref<128x384xf32, #tpu.memory_space<vmem>>, vector<128x384xf32>
    %cst_7 = arith.constant dense<0.000000e+00> : vector<8x384xf32>
    %5 = tpu.matmul %3, %4, %cst_7 {dimension_numbers = #tpu.dot_dimension_numbers<[1], [0], [0], [1], [0, 0, 1, 1], [], []>} : vector<8x128xf32>, vector<128x384xf32>, vector<8x384xf32> -> vector<8x384xf32>
    %6 = arith.addf %2, %5 : vector<8x384xf32>
    %c0_8 = arith.constant 0 : index
    %c0_9 = arith.constant 0 : index
    %7 = vector.load %arg1[%c0_8, %c0_9] : memref<8x128xf32, #tpu.memory_space<vmem>>, vector<8x128xf32>
    %c0_10 = arith.constant 0 : index
    %c0_11 = arith.constant 0 : index
    %8 = vector.load %arg3[%c0_10, %c0_11] : memref<8x128xf32, #tpu.memory_space<vmem>>, vector<8x128xf32>
    %c0_12 = arith.constant 0 : index
    %c0_13 = arith.constant 0 : index
    %9 = vector.load %arg6[%c0_12, %c0_13] : memref<3x384xf32, #tpu.memory_space<vmem>>, vector<3x384xf32>
    %10 = vector.extract_strided_slice %9 {offsets = [0, 0], sizes = [1, 384], strides = [1, 1]} : vector<3x384xf32> to vector<1x384xf32>
    %11 = vector.extract_strided_slice %9 {offsets = [1, 0], sizes = [1, 384], strides = [1, 1]} : vector<3x384xf32> to vector<1x384xf32>
    %12 = vector.extract_strided_slice %9 {offsets = [2, 0], sizes = [1, 384], strides = [1, 1]} : vector<3x384xf32> to vector<1x384xf32>
    %13 = vector.broadcast %10 : vector<1x384xf32> to vector<8x384xf32>
    %14 = arith.addf %6, %13 : vector<8x384xf32>
    %cst_14 = arith.constant dense<0.000000e+00> : vector<8xf32>
    %15 = vector.multi_reduction <add>, %14, %cst_14 [1] : vector<8x384xf32> to vector<8xf32>
    %16 = vector.shape_cast %15 : vector<8xf32> to vector<8x1xf32>
    %cst_15 = arith.constant 0.010416667 : f32
    %17 = vector.broadcast %cst_15 : f32 to vector<8x1xf32>
    %18 = arith.mulf %16, %17 : vector<8x1xf32>
    %19 = arith.mulf %14, %14 : vector<8x384xf32>
    %cst_16 = arith.constant dense<0.000000e+00> : vector<8xf32>
    %20 = vector.multi_reduction <add>, %19, %cst_16 [1] : vector<8x384xf32> to vector<8xf32>
    %21 = vector.shape_cast %20 : vector<8xf32> to vector<8x1xf32>
    %cst_17 = arith.constant 0.010416667 : f32
    %22 = vector.broadcast %cst_17 : f32 to vector<8x1xf32>
    %23 = arith.mulf %21, %22 : vector<8x1xf32>
    %24 = arith.mulf %18, %18 : vector<8x1xf32>
    %25 = arith.subf %23, %24 : vector<8x1xf32>
    %cst_18 = arith.constant 0.000000e+00 : f32
    %26 = vector.broadcast %cst_18 : f32 to vector<8x1xf32>
    %27 = arith.maximumf %25, %26 : vector<8x1xf32>
    %28 = vector.broadcast %18 : vector<8x1xf32> to vector<8x384xf32>
    %29 = arith.subf %14, %28 : vector<8x384xf32>
    %cst_19 = arith.constant 9.99999997E-7 : f32
    %30 = vector.broadcast %cst_19 : f32 to vector<8x1xf32>
    %31 = arith.addf %27, %30 : vector<8x1xf32>
    %32 = math.rsqrt %31 : vector<8x1xf32>
    %33 = vector.broadcast %32 : vector<8x1xf32> to vector<8x384xf32>
    %34 = arith.mulf %29, %33 : vector<8x384xf32>
    %35 = vector.broadcast %11 : vector<1x384xf32> to vector<8x384xf32>
    %36 = arith.mulf %34, %35 : vector<8x384xf32>
    %37 = vector.broadcast %12 : vector<1x384xf32> to vector<8x384xf32>
    %38 = arith.addf %36, %37 : vector<8x384xf32>
    %39 = arith.negf %38 : vector<8x384xf32>
    %40 = math.exp %39 : vector<8x384xf32>
    %cst_20 = arith.constant 1.000000e+00 : f32
    %41 = vector.broadcast %cst_20 : f32 to vector<8x384xf32>
    %42 = arith.addf %41, %40 : vector<8x384xf32>
    %43 = arith.divf %41, %42 : vector<8x384xf32>
    %44 = vector.extract_strided_slice %43 {offsets = [0, 0], sizes = [8, 128], strides = [1, 1]} : vector<8x384xf32> to vector<8x128xf32>
    %45 = vector.extract_strided_slice %43 {offsets = [0, 128], sizes = [8, 128], strides = [1, 1]} : vector<8x384xf32> to vector<8x128xf32>
    %46 = vector.extract_strided_slice %43 {offsets = [0, 256], sizes = [8, 128], strides = [1, 1]} : vector<8x384xf32> to vector<8x128xf32>
    %47 = arith.mulf %45, %8 : vector<8x128xf32>
    %48 = arith.mulf %44, %7 : vector<8x128xf32>
    %49 = arith.addf %47, %48 : vector<8x128xf32>
    %50 = arith.mulf %46, %49 : vector<8x128xf32>
    %c0_21 = arith.constant 0 : index
    %c0_22 = arith.constant 0 : index
    %51 = vector.load %arg8[%c0_21, %c0_22] : memref<8x128xf32, #tpu.memory_space<vmem>>, vector<8x128xf32>
    tpu.vector_store %arg8[%c0_21, %c0_22], %49 {strides = array<i32>} : memref<8x128xf32, #tpu.memory_space<vmem>>, vector<8x128xf32>,
    %c0_23 = arith.constant 0 : index
    %c0_24 = arith.constant 0 : index
    %52 = vector.load %arg7[%c0_23, %c0_24] : memref<8x128xf32, #tpu.memory_space<vmem>>, vector<8x128xf32>
    tpu.vector_store %arg7[%c0_23, %c0_24], %50 {strides = array<i32>} : memref<8x128xf32, #tpu.memory_space<vmem>>, vector<8x128xf32>,
    return
  }
  func.func @transform_0(%arg0: i32) -> (i32, i32) {
    %c0_i32 = arith.constant 0 : i32
    %c0_i32_0 = arith.constant 0 : i32
    return %arg0, %c0_i32 : i32, i32
  }
  func.func @transform_1(%arg0: i32) -> (i32, i32) {
    %c0_i32 = arith.constant 0 : i32
    %c0_i32_0 = arith.constant 0 : i32
    return %arg0, %c0_i32 : i32, i32
  }
  func.func @transform_2(%arg0: i32) -> (i32, i32) {
    %c0_i32 = arith.constant 0 : i32
    %c0_i32_0 = arith.constant 0 : i32
    return %arg0, %c0_i32 : i32, i32
  }
  func.func @transform_3(%arg0: i32) -> (i32, i32) {
    %c0_i32 = arith.constant 0 : i32
    %c0_i32_0 = arith.constant 0 : i32
    %c0_i32_1 = arith.constant 0 : i32
    return %c0_i32, %c0_i32_0 : i32, i32
  }
  func.func @transform_4(%arg0: i32) -> (i32, i32) {
    %c0_i32 = arith.constant 0 : i32
    %c0_i32_0 = arith.constant 0 : i32
    %c0_i32_1 = arith.constant 0 : i32
    return %c0_i32, %c0_i32_0 : i32, i32
  }
  func.func @transform_5(%arg0: i32) -> (i32, i32) {
    %c0_i32 = arith.constant 0 : i32
    %c0_i32_0 = arith.constant 0 : i32
    %c0_i32_1 = arith.constant 0 : i32
    return %c0_i32, %c0_i32_0 : i32, i32
  }
  func.func @transform_6(%arg0: i32) -> (i32, i32) {
    %c0_i32 = arith.constant 0 : i32
    %c0_i32_0 = arith.constant 0 : i32
    return %arg0, %c0_i32 : i32, i32
  }
  func.func @transform_7(%arg0: i32) -> (i32, i32) {
    %c0_i32 = arith.constant 0 : i32
    %c0_i32_0 = arith.constant 0 : i32
    return %arg0, %c0_i32 : i32, i32
  }
}

</mosaic_0001>

<bundles_post_ra>
// kernel: tpu_custom_call.1
= control target key start
LH: loop header
LB: loop body
LE: loop exit
PB: predicated region body
PF: predicated region fallthrough
CT: control target
= control target key end

     0   :  { %13 = vsyncpa [#allocation3], 0  ;;  %s1100_s0 = inlined_call_operand.hbm [shape: f32[6,128], index: 0, kind: input, shape index: {}]   ;;  %s1101_s1 = inlined_call_operand.hbm [shape: f32[6,128], index: 1, kind: input, shape index: {}]   ;;  %s1102_s2 = inlined_call_operand.hbm [shape: f32[6,128], index: 2, kind: input, shape index: {}]   ;;  %s1103_s3 = inlined_call_operand.hbm [shape: f32[128,384], index: 3, kind: input, shape index: {}]   ;;  %s1104_s4 = inlined_call_operand.hbm [shape: f32[128,384], index: 4, kind: input, shape index: {}]   ;;  %s1105_s5 = inlined_call_operand.hbm [shape: f32[3,384], index: 5, kind: input, shape index: {}]   ;;  %s1106_s6 = inlined_call_operand.hbm [shape: f32[6,128], index: 6, kind: output, shape index: {0}]   ;;  %s1107_s7 = inlined_call_operand.hbm [shape: f32[6,128], index: 7, kind: output, shape index: {1}]  }
   0x1   :  { %14 = vsyncpa [#allocation6], 0 }
   0x2   :  { %15 = vsyncpa [#allocation9], 0 }
   0x3   :  { %16 = vsyncpa [#allocation12], 0 }
   0x4   :  { %17 = vsyncpa [#allocation4], 0 }
   0x5   :  { %18 = vsyncpa [#allocation15], 0  ;;  %s961_s24 = smov [#allocation5]   ;;  %s962_s26 = smov [#allocation8]  }
   0x6   :  { %s35_s25 = sshll.u32 %s961_s24, 4  ;;  %s54_s27 = sshll.u32 %s962_s26, 4  ;;  %s36_s25 = int_to_ptr.vmem [resolvable:$true] %s35_s25  ;;  %s55_s27 = int_to_ptr.vmem [resolvable:$true] %s54_s27 }
   0x7   :  { %s797_s28 = scalar_lea.vmem %s36_s25, 128  ;;  %p802_p1 = scmp.lt.s32.totalorder %s36_s25, %s36_s25 }
   0x8   :  { %p798_p0 = scmp.ne.s32.totalorder %s36_s25, %s797_s28  ;;  %p803_p2 = scmp.lt.s32.totalorder %s797_s28, %s797_s28 }
   0xa   :  { %p804_p3 = por %p803_p2, %p802_p1 }
   0xc   :  { %p805_p4 = pnand %p804_p3, %p798_p0 }
   0xe   :  { %808 = shalt.err (!%p805_p4)
}
   0xf   :  { %38 = dma.hbm_to_vmem [thread:$0]  %s1101_s1, 128, %s36_s25, [#allocation6]  }
  0x10   :  { %s817_s8 = scalar_lea.vmem %s55_s27, 6144  ;;  %p822_p6 = scmp.lt.s32.totalorder %s55_s27, %s55_s27 }
  0x11   :  { %p818_p5 = scmp.ne.s32.totalorder %s55_s27, %s817_s8  ;;  %p823_p7 = scmp.lt.s32.totalorder %s817_s8, %s817_s8 }
  0x13   :  { %p824_p8 = por %p823_p7, %p822_p6 }
  0x15   :  { %p825_p9 = pnand %p824_p8, %p818_p5 }
  0x17   :  { %828 = shalt.err (!%p825_p9)
}
  0x18   :  { %s963_s9 = smov 384   ;;  %s964_s10 = smov 24  }
  0x19   :  { %60 = dma.hbm_to_vmem [thread:$0]  %s1103_s3, 6144, %s55_s27, [#allocation9], %s963_s9, %s963_s9, %s964_s10  }
  0x1a   :  { %s965_s13 = smov [#allocation2]   ;;  %s966_s15 = smov [#allocation7]  }
  0x1b   :  { %s25_s14 = sshll.u32 %s965_s13, 4  ;;  %s45_s1 = sshll.u32 %s966_s15, 4  ;;  %s26_s14 = int_to_ptr.vmem [resolvable:$true] %s25_s14  ;;  %s46_s1 = int_to_ptr.vmem [resolvable:$true] %s45_s1 }
  0x1c   :  { %s837_s16 = scalar_lea.vmem %s26_s14, 128  ;;  %p842_p11 = scmp.lt.s32.totalorder %s26_s14, %s26_s14 }
  0x1d   :  { %p838_p10 = scmp.ne.s32.totalorder %s26_s14, %s837_s16  ;;  %p843_p12 = scmp.lt.s32.totalorder %s837_s16, %s837_s16 }
  0x1f   :  { %p844_p13 = por %p843_p12, %p842_p11 }
  0x21   :  { %p845_p0 = pnand %p844_p13, %p838_p10 }
  0x23   :  { %848 = shalt.err (!%p845_p0)
}
  0x24   :  { %28 = dma.hbm_to_vmem [thread:$0]  %s1100_s0, 128, %s26_s14, [#allocation3]  }
  0x25   :  { %s857_s19 = scalar_lea.vmem %s46_s1, 128  ;;  %p862_p2 = scmp.lt.s32.totalorder %s46_s1, %s46_s1 }
  0x26   :  { %p858_p1 = scmp.ne.s32.totalorder %s46_s1, %s857_s19  ;;  %p863_p3 = scmp.lt.s32.totalorder %s857_s19, %s857_s19 }
  0x28   :  { %p864_p4 = por %p863_p3, %p862_p2 }
  0x2a   :  { %p865_p5 = pnand %p864_p4, %p858_p1 }
  0x2c   :  { %868 = shalt.err (!%p865_p5)
}
  0x2d   :  { %48 = dma.hbm_to_vmem [thread:$0]  %s1102_s2, 128, %s46_s1, [#allocation6]  }
  0x2e   :  { %s967_s21 = smov [#allocation10]   ;;  %s968_s23 = smov [#allocation11]  }
  0x2f   :  { %s66_s22 = sshll.u32 %s967_s21, 4  ;;  %s79_s24 = sshll.u32 %s968_s23, 4  ;;  %s67_s22 = int_to_ptr.vmem [resolvable:$true] %s66_s22  ;;  %s80_s24 = int_to_ptr.vmem [resolvable:$true] %s79_s24 }
  0x30   :  { %s877_s25 = scalar_lea.vmem %s67_s22, 6144  ;;  %p882_p7 = scmp.lt.s32.totalorder %s67_s22, %s67_s22 }
  0x31   :  { %p878_p6 = scmp.ne.s32.totalorder %s67_s22, %s877_s25  ;;  %p883_p8 = scmp.lt.s32.totalorder %s877_s25, %s877_s25 }
  0x33   :  { %p884_p9 = por %p883_p8, %p882_p7 }
  0x35   :  { %p885_p10 = pnand %p884_p9, %p878_p6 }
  0x37   :  { %888 = shalt.err (!%p885_p10)
}
  0x38   :  { %72 = dma.hbm_to_vmem [thread:$0]  %s1104_s4, 6144, %s67_s22, [#allocation9], %s963_s9, %s963_s9, %s964_s10  }
  0x39   :  { %s897_s2 = scalar_lea.vmem %s80_s24, 192  ;;  %p902_p12 = scmp.lt.s32.totalorder %s80_s24, %s80_s24 }
  0x3a   :  { %p898_p11 = scmp.ne.s32.totalorder %s80_s24, %s897_s2  ;;  %p903_p13 = scmp.lt.s32.totalorder %s897_s2, %s897_s2 }
  0x3c   :  { %p904_p0 = por %p903_p13, %p902_p12 }
  0x3e   :  { %p905_p1 = pnand %p904_p0, %p898_p11 }
  0x40   :  { %908 = shalt.err (!%p905_p1)
}
  0x41   :  { %82 = dma.hbm_to_vmem [thread:$0]  %s1105_s5, 192, %s80_s24, [#allocation12]  }
  0x42   :  { %949 = dma.done.wait [#allocation3], 128  }
  0x43   :  { %950 = vsyncadd [#allocation3], 4294967168 }
  0x44   :  { %951 = dma.done.wait [#allocation6], 256  }
  0x45   :  { %952 = vsyncadd [#allocation6], 4294967040 }
  0x46   :  { %953 = dma.done.wait [#allocation9], 12288  }
  0x47   :  { %954 = vsyncadd [#allocation9], 4294955008 }
  0x48   :  { %955 = dma.done.wait [#allocation12], 192  }
  0x49   :  { %956 = vsyncadd [#allocation12], 4294967104  ;;  %v969_v0 = vmov 0.0   ;;  %vm970_vm0 = vmmov 0   ;;  %v197_v1 = vld [vmem:[#allocation10 + $0x170] sm:$0xff]  ;;  %v198_v2 = vld [vmem:[#allocation10 + $0x178] sm:$0xff] }
  0x4a   :  { %693 = vmatprep.subr.mxu1 %v969_v0  ;;  %263 = vmatprep.mubr.f32.mxu0 %v969_v0  ;;  %v196_v3 = vld [vmem:[#allocation10 + $0x168] sm:$0xff]  ;;  %v194_v4 = vld [vmem:[#allocation10 + $0x158] sm:$0xff]  ;;  %v195_v5 = vld [vmem:[#allocation10 + $0x160] sm:$0xff]  ;;  %s971_s4 = smov [#allocation14]   ;;  %s972_s29 = smov [#allocation13]  }
  0x4b   :  { %725 = vmatprep.mubr.msk.f32.mxu1 %vm970_vm0, %v969_v0  ;;  %199 = vmatprep.subr.mxu0 %v197_v1  ;;  %v193_v6 = vld [vmem:[#allocation10 + $0x150] sm:$0xff]  ;;  %v191_v7 = vld [vmem:[#allocation10 + $0x140] sm:$0xff]  ;;  %v192_v8 = vld [vmem:[#allocation10 + $0x148] sm:$0xff]  ;;  %s640_s5 = sshll.u32 %s971_s4, 4  ;;  %s630_s30 = sshll.u32 %s972_s29, 4  ;;  %s641_s5 = int_to_ptr.vmem [resolvable:$true] %s640_s5  ;;  %s631_s30 = int_to_ptr.vmem [resolvable:$true] %s630_s30 }
  0x4c   :  { %694 = vmatpush3.msra.mxu1 %v198_v2  ;;  %200 = vmatpush1.msra.mxu0 %v196_v3  ;;  %v190_v9 = vld [vmem:[#allocation10 + $0x138] sm:$0xff]  ;;  %v188_v10 = vld [vmem:[#allocation10 + $0x128] sm:$0xff]  ;;  %v189_v11 = vld [vmem:[#allocation10 + $0x130] sm:$0xff]  ;;  %s909_s8 = scalar_lea.vmem %s641_s5, 128  ;;  %p914_p3 = scmp.lt.s32.totalorder %s641_s5, %s641_s5 }
  0x4d   :  { %695 = vmatprep.subr.mxu1 %v969_v0  ;;  %201 = vmatprep.subr.mxu0 %v194_v4  ;;  %v187_v12 = vld [vmem:[#allocation10 + $0x120] sm:$0xff]  ;;  %v185_v13 = vld [vmem:[#allocation10 + $0x110] sm:$0xff]  ;;  %v186_v14 = vld [vmem:[#allocation10 + $0x118] sm:$0xff]  ;;  %p910_p2 = scmp.ne.s32.totalorder %s641_s5, %s909_s8  ;;  %p915_p4 = scmp.lt.s32.totalorder %s909_s8, %s909_s8 }
  0x4e   :  { %696 = vmatpush3.msra.mxu1 %v195_v5  ;;  %202 = vmatpush1.msra.mxu0 %v193_v6  ;;  %v184_v15 = vld [vmem:[#allocation10 + $0x108] sm:$0xff]  ;;  %v182_v16 = vld [vmem:[#allocation10 + $0xf8] sm:$0xff]  ;;  %v183_v17 = vld [vmem:[#allocation10 + $0x100] sm:$0xff] }
  0x4f   :  { %697 = vmatprep.subr.mxu1 %v969_v0  ;;  %203 = vmatprep.subr.mxu0 %v191_v7  ;;  %v181_v18 = vld [vmem:[#allocation10 + $0xf0] sm:$0xff]  ;;  %v179_v19 = vld [vmem:[#allocation10 + $0xe0] sm:$0xff]  ;;  %v180_v20 = vld [vmem:[#allocation10 + $0xe8] sm:$0xff]  ;;  %p916_p5 = por %p915_p4, %p914_p3 }
  0x50   :  { %698 = vmatpush3.msra.mxu1 %v192_v8  ;;  %204 = vmatpush1.msra.mxu0 %v190_v9  ;;  %v178_v21 = vld [vmem:[#allocation10 + $0xd8] sm:$0xff]  ;;  %v176_v22 = vld [vmem:[#allocation10 + $0xc8] sm:$0xff]  ;;  %v177_v23 = vld [vmem:[#allocation10 + $0xd0] sm:$0xff] }
  0x51   :  { %699 = vmatprep.subr.mxu1 %v969_v0  ;;  %205 = vmatprep.subr.mxu0 %v188_v10  ;;  %v175_v24 = vld [vmem:[#allocation10 + $0xc0] sm:$0xff]  ;;  %v173_v25 = vld [vmem:[#allocation10 + $0xb0] sm:$0xff]  ;;  %v174_v26 = vld [vmem:[#allocation10 + $0xb8] sm:$0xff]  ;;  %p917_p6 = pnand %p916_p5, %p910_p2 }
  0x52   :  { %700 = vmatpush3.msra.mxu1 %v189_v11  ;;  %206 = vmatpush1.msra.mxu0 %v187_v12  ;;  %v172_v27 = vld [vmem:[#allocation10 + $0xa8] sm:$0xff]  ;;  %v170_v28 = vld [vmem:[#allocation10 + $0x98] sm:$0xff]  ;;  %v171_v29 = vld [vmem:[#allocation10 + $0xa0] sm:$0xff] }
  0x53   :  { %701 = vmatprep.subr.mxu1 %v969_v0  ;;  %207 = vmatprep.subr.mxu0 %v185_v13  ;;  %v169_v30 = vld [vmem:[#allocation10 + $0x90] sm:$0xff]  ;;  %v167_v31 = vld [vmem:[#allocation10 + $0x80] sm:$0xff]  ;;  %v168_v32 = vld [vmem:[#allocation10 + $0x88] sm:$0xff] }
  0x54   :  { %702 = vmatpush3.msra.mxu1 %v186_v14  ;;  %208 = vmatpush1.msra.mxu0 %v184_v15  ;;  %v166_v33 = vld [vmem:[#allocation10 + $0x78] sm:$0xff]  ;;  %v164_v34 = vld [vmem:[#allocation10 + $0x68] sm:$0xff]  ;;  %v165_v35 = vld [vmem:[#allocation10 + $0x70] sm:$0xff] }
  0x55   :  { %703 = vmatprep.subr.mxu1 %v969_v0  ;;  %209 = vmatprep.subr.mxu0 %v182_v16  ;;  %v163_v36 = vld [vmem:[#allocation10 + $0x60] sm:$0xff]  ;;  %v161_v37 = vld [vmem:[#allocation10 + $0x50] sm:$0xff]  ;;  %v162_v38 = vld [vmem:[#allocation10 + $0x58] sm:$0xff] }
  0x56   :  { %704 = vmatpush3.msra.mxu1 %v183_v17  ;;  %210 = vmatpush1.msra.mxu0 %v181_v18  ;;  %v160_v39 = vld [vmem:[#allocation10 + $0x48] sm:$0xff]  ;;  %v158_v40 = vld [vmem:[#allocation10 + $0x38] sm:$0xff]  ;;  %v159_v41 = vld [vmem:[#allocation10 + $0x40] sm:$0xff] }
  0x57   :  { %705 = vmatprep.subr.mxu1 %v969_v0  ;;  %211 = vmatprep.subr.mxu0 %v179_v19  ;;  %v157_v42 = vld [vmem:[#allocation10 + $0x30] sm:$0xff]  ;;  %v155_v43 = vld [vmem:[#allocation10 + $0x20] sm:$0xff]  ;;  %v156_v44 = vld [vmem:[#allocation10 + $0x28] sm:$0xff] }
  0x58   :  { %706 = vmatpush3.msra.mxu1 %v180_v20  ;;  %212 = vmatpush1.msra.mxu0 %v178_v21  ;;  %v154_v45 = vld [vmem:[#allocation10 + $0x18] sm:$0xff]  ;;  %v152_v46 = vld [vmem:[#allocation10 + $0x8] sm:$0xff]  ;;  %v153_v47 = vld [vmem:[#allocation10 + $0x10] sm:$0xff] }
  0x59   :  { %707 = vmatprep.subr.mxu1 %v969_v0  ;;  %213 = vmatprep.subr.mxu0 %v176_v22  ;;  %v151_v48 = vld [vmem:[#allocation10] sm:$0xff]  ;;  %v150_v49 = vld [vmem:[#allocation5] sm:$0xff]  ;;  %v149_v51 = vld [vmem:[#allocation8 + $0x178] sm:$0xff] }
  0x5a   :  { %708 = vmatpush3.msra.mxu1 %v177_v23  ;;  %214 = vmatpush1.msra.mxu0 %v175_v24  ;;  %v148_v50 = vld [vmem:[#allocation8 + $0x170] sm:$0xff]  ;;  %v147_v52 = vld [vmem:[#allocation8 + $0x168] sm:$0xff]  ;;  %v145_v53 = vld [vmem:[#allocation8 + $0x158] sm:$0xff] }
  0x5b   :  { %709 = vmatprep.subr.mxu1 %v969_v0  ;;  %215 = vmatprep.subr.mxu0 %v173_v25  ;;  %v146_v54 = vld [vmem:[#allocation8 + $0x160] sm:$0xff]  ;;  %v144_v55 = vld [vmem:[#allocation8 + $0x150] sm:$0xff]  ;;  %v143_v57 = vld [vmem:[#allocation8 + $0x148] sm:$0xff] }
  0x5c   :  { %710 = vmatpush3.msra.mxu1 %v174_v26  ;;  %216 = vmatpush1.msra.mxu0 %v172_v27  ;;  %v142_v56 = vld [vmem:[#allocation8 + $0x140] sm:$0xff]  ;;  %v141_v58 = vld [vmem:[#allocation8 + $0x138] sm:$0xff]  ;;  %v139_v59 = vld [vmem:[#allocation8 + $0x128] sm:$0xff] }
  0x5d   :  { %711 = vmatprep.subr.mxu1 %v969_v0  ;;  %217 = vmatprep.subr.mxu0 %v170_v28  ;;  %v140_v60 = vld [vmem:[#allocation8 + $0x130] sm:$0xff]  ;;  %v138_v61 = vld [vmem:[#allocation8 + $0x120] sm:$0xff]  ;;  %v137_v63 = vld [vmem:[#allocation8 + $0x118] sm:$0xff] }
  0x5e   :  { %712 = vmatpush3.msra.mxu1 %v171_v29  ;;  %218 = vmatpush1.msra.mxu0 %v169_v30  ;;  %v136_v62 = vld [vmem:[#allocation8 + $0x110] sm:$0xff]  ;;  %v135_v1 = vld [vmem:[#allocation8 + $0x108] sm:$0xff]  ;;  %v133_v2 = vld [vmem:[#allocation8 + $0xf8] sm:$0xff] }
  0x5f   :  { %713 = vmatprep.subr.mxu1 %v969_v0  ;;  %219 = vmatprep.subr.mxu0 %v167_v31  ;;  %v134_v3 = vld [vmem:[#allocation8 + $0x100] sm:$0xff]  ;;  %v132_v4 = vld [vmem:[#allocation8 + $0xf0] sm:$0xff]  ;;  %v131_v6 = vld [vmem:[#allocation8 + $0xe8] sm:$0xff] }
  0x60   :  { %714 = vmatpush3.msra.mxu1 %v168_v32  ;;  %220 = vmatpush1.msra.mxu0 %v166_v33  ;;  %v130_v5 = vld [vmem:[#allocation8 + $0xe0] sm:$0xff]  ;;  %v129_v7 = vld [vmem:[#allocation8 + $0xd8] sm:$0xff]  ;;  %v127_v8 = vld [vmem:[#allocation8 + $0xc8] sm:$0xff] }
  0x61   :  { %715 = vmatprep.subr.mxu1 %v969_v0  ;;  %221 = vmatprep.subr.mxu0 %v164_v34  ;;  %v128_v9 = vld [vmem:[#allocation8 + $0xd0] sm:$0xff]  ;;  %v126_v10 = vld [vmem:[#allocation8 + $0xc0] sm:$0xff]  ;;  %v125_v12 = vld [vmem:[#allocation8 + $0xb8] sm:$0xff] }
  0x62   :  { %716 = vmatpush3.msra.mxu1 %v165_v35  ;;  %222 = vmatpush1.msra.mxu0 %v163_v36  ;;  %v124_v11 = vld [vmem:[#allocation8 + $0xb0] sm:$0xff]  ;;  %v123_v13 = vld [vmem:[#allocation8 + $0xa8] sm:$0xff]  ;;  %v121_v14 = vld [vmem:[#allocation8 + $0x98] sm:$0xff]  ;;  %v486_v36 = vlaneseq }
  0x63   :  { %717 = vmatprep.subr.mxu1 %v969_v0  ;;  %223 = vmatprep.subr.mxu0 %v161_v37  ;;  %v122_v15 = vld [vmem:[#allocation8 + $0xa0] sm:$0xff]  ;;  %v120_v16 = vld [vmem:[#allocation8 + $0x90] sm:$0xff]  ;;  %v119_v18 = vld [vmem:[#allocation8 + $0x88] sm:$0xff] }
  0x64   :  { %718 = vmatpush3.msra.mxu1 %v162_v38  ;;  %224 = vmatpush1.msra.mxu0 %v160_v39  ;;  %v118_v17 = vld [vmem:[#allocation8 + $0x80] sm:$0xff]  ;;  %v117_v19 = vld [vmem:[#allocation8 + $0x78] sm:$0xff]  ;;  %v115_v20 = vld [vmem:[#allocation8 + $0x68] sm:$0xff]  ;;  %v487_v37 = vshrl.u32 %v486_v36, 7 }
  0x65   :  { %719 = vmatprep.subr.mxu1 %v969_v0  ;;  %225 = vmatprep.subr.mxu0 %v158_v40  ;;  %v116_v21 = vld [vmem:[#allocation8 + $0x70] sm:$0xff]  ;;  %v114_v22 = vld [vmem:[#allocation8 + $0x60] sm:$0xff]  ;;  %v113_v24 = vld [vmem:[#allocation8 + $0x58] sm:$0xff] }
  0x66   :  { %720 = vmatpush3.msra.mxu1 %v159_v41  ;;  %226 = vmatpush1.msra.mxu0 %v157_v42  ;;  %v112_v23 = vld [vmem:[#allocation8 + $0x50] sm:$0xff]  ;;  %v111_v25 = vld [vmem:[#allocation8 + $0x48] sm:$0xff]  ;;  %v109_v26 = vld [vmem:[#allocation8 + $0x38] sm:$0xff]  ;;  %v1079_v38 = vsub.s32 1, %v487_v37  ;;  %v1081_v39 = vsub.s32 2, %v487_v37  ;;  %v546_v42 = vsub.s32 5, %v487_v37 }
  0x67   :  { %721 = vmatprep.subr.mxu1 %v969_v0  ;;  %227 = vmatprep.subr.mxu0 %v155_v43  ;;  %v110_v27 = vld [vmem:[#allocation8 + $0x40] sm:$0xff]  ;;  %v108_v28 = vld [vmem:[#allocation8 + $0x30] sm:$0xff]  ;;  %v107_v30 = vld [vmem:[#allocation8 + $0x28] sm:$0xff]  ;;  %v576_v43 = vsub.s32 6, %v487_v37 }
  0x68   :  { %722 = vmatpush3.msra.mxu1 %v156_v44  ;;  %228 = vmatpush1.msra.mxu0 %v154_v45  ;;  %v106_v29 = vld [vmem:[#allocation8 + $0x20] sm:$0xff]  ;;  %v105_v31 = vld [vmem:[#allocation8 + $0x18] sm:$0xff]  ;;  %v103_v32 = vld [vmem:[#allocation8 + $0x8] sm:$0xff] }
  0x69   :  { %723 = vmatprep.subr.mxu1 %v969_v0  ;;  %229 = vmatprep.subr.mxu0 %v152_v46  ;;  %v104_v33 = vld [vmem:[#allocation8 + $0x10] sm:$0xff]  ;;  %v102_v34 = vld [vmem:[#allocation8] sm:$0xff]  ;;  %v1072_v35 = vld [vmem:[#allocation2] sm:$0xff] }
  0x6a   :  { %724 = vmatpush3.msra.mxu1 %v153_v47  ;;  %230 = vmatpush1.msra.mxu0 %v151_v48  ;;  %v483_v40 = vld [vmem:[#allocation11 + $0x8] sm:$0x7]  ;;  %v482_v41 = vld [vmem:[#allocation11] sm:$0x77] }
  0x6b   :  { %728 = vmatprep.subr.mxu1 %v969_v0  ;;  %264 = vmatmul.mubr.f32.vlgmr.msra.gmra.mxu0 %v150_v49  ;;  %v551_v44 = vrot.slane %v483_v40, %v1079_v38  ;;  %v581_v45 = vrot.slane %v483_v40, %v1081_v39  ;;  %v573_v46 = vrot.slane %v482_v41, %v1081_v39 }
  0x6c   :  { %726 = vmatmul.mubr.f32.vlgmr.msra.gmra.mxu1 %v150_v49  ;;  %340 = vmatprep.subr.mxu0 %v148_v50  ;;  %v547_v47 = vrot.slane %v482_v41, %v546_v42  ;;  %v577_v48 = vrot.slane %v482_v41, %v576_v43 }
  0x6d   :  { %729 = vmatpush3.msra.mxu1 %v149_v51  ;;  %341 = vmatpush1.msra.mxu0 %v147_v52  ;;  %v566_v49 = vrot.slane %v551_v44, %v1079_v38  ;;  %v596_v50 = vrot.slane %v581_v45, %v1081_v39  ;;  %v588_v52 = vrot.slane %v573_v46, %v1081_v39 }
  0x6e   :  { %730 = vmatprep.subr.mxu1 %v969_v0  ;;  %342 = vmatprep.subr.mxu0 %v145_v53  ;;  %v562_v53 = vrot.slane %v547_v47, %v1079_v38 }
  0x6f   :  { %731 = vmatpush3.msra.mxu1 %v146_v54  ;;  %343 = vmatpush1.msra.mxu0 %v144_v55  ;;  %v592_v54 = vrot.slane %v577_v48, %v1081_v39 }
  0x70   :  { %732 = vmatprep.subr.mxu1 %v969_v0  ;;  %344 = vmatprep.subr.mxu0 %v142_v56 }
  0x71   :  { %733 = vmatpush3.msra.mxu1 %v143_v57  ;;  %345 = vmatpush1.msra.mxu0 %v141_v58  ;;  %v488_v57 = vsub.s32 0, %v487_v37  ;;  %v492_v58 = vsub.s32 4, %v487_v37 }
  0x72   :  { %734 = vmatprep.subr.mxu1 %v969_v0  ;;  %346 = vmatprep.subr.mxu0 %v139_v59 }
  0x73   :  { %735 = vmatpush3.msra.mxu1 %v140_v60  ;;  %347 = vmatpush1.msra.mxu0 %v138_v61  ;;  %v489_v60 = vrot.slane %v482_v41, %v488_v57  ;;  %v493_v61 = vrot.slane %v482_v41, %v492_v58 }
  0x74   :  { %736 = vmatprep.subr.mxu1 %v969_v0  ;;  %348 = vmatprep.subr.mxu0 %v136_v62 }
  0x75   :  { %737 = vmatpush3.msra.mxu1 %v137_v63  ;;  %349 = vmatpush1.msra.mxu0 %v135_v1  ;;  %v497_v1 = vrot.slane %v483_v40, %v488_v57 }
  0x76   :  { %738 = vmatprep.subr.mxu1 %v969_v0  ;;  %350 = vmatprep.subr.mxu0 %v133_v2  ;;  %v504_v2 = vrot.slane %v489_v60, %v488_v57 }
  0x77   :  { %739 = vmatpush3.msra.mxu1 %v134_v3  ;;  %351 = vmatpush1.msra.mxu0 %v132_v4 }
  0x78   :  { %740 = vmatprep.subr.mxu1 %v969_v0  ;;  %352 = vmatprep.subr.mxu0 %v130_v5  ;;  %v508_v5 = vrot.slane %v493_v61, %v488_v57 }
  0x79   :  { %741 = vmatpush3.msra.mxu1 %v131_v6  ;;  %353 = vmatpush1.msra.mxu0 %v129_v7 }
  0x7a   :  { %742 = vmatprep.subr.mxu1 %v969_v0  ;;  %354 = vmatprep.subr.mxu0 %v127_v8 }
  0x7b   :  { %743 = vmatpush3.msra.mxu1 %v128_v9  ;;  %355 = vmatpush1.msra.mxu0 %v126_v10  ;;  %v512_v9 = vrot.slane %v497_v1, %v488_v57 }
  0x7c   :  { %744 = vmatprep.subr.mxu1 %v969_v0  ;;  %356 = vmatprep.subr.mxu0 %v124_v11 }
  0x7d   :  { %745 = vmatpush3.msra.mxu1 %v125_v12  ;;  %357 = vmatpush1.msra.mxu0 %v123_v13 }
  0x7e   :  { %746 = vmatprep.subr.mxu1 %v969_v0  ;;  %358 = vmatprep.subr.mxu0 %v121_v14 }
  0x7f   :  { %747 = vmatpush3.msra.mxu1 %v122_v15  ;;  %359 = vmatpush1.msra.mxu0 %v120_v16 }
  0x80   :  { %748 = vmatprep.subr.mxu1 %v969_v0  ;;  %360 = vmatprep.subr.mxu0 %v118_v17 }
  0x81   :  { %749 = vmatpush3.msra.mxu1 %v119_v18  ;;  %361 = vmatpush1.msra.mxu0 %v117_v19 }
  0x82   :  { %750 = vmatprep.subr.mxu1 %v969_v0  ;;  %362 = vmatprep.subr.mxu0 %v115_v20 }
  0x83   :  { %751 = vmatpush3.msra.mxu1 %v116_v21  ;;  %363 = vmatpush1.msra.mxu0 %v114_v22 }
  0x84   :  { %752 = vmatprep.subr.mxu1 %v969_v0  ;;  %364 = vmatprep.subr.mxu0 %v112_v23 }
  0x85   :  { %753 = vmatpush3.msra.mxu1 %v113_v24  ;;  %365 = vmatpush1.msra.mxu0 %v111_v25 }
  0x86   :  { %754 = vmatprep.subr.mxu1 %v969_v0  ;;  %366 = vmatprep.subr.mxu0 %v109_v26 }
  0x87   :  { %755 = vmatpush3.msra.mxu1 %v110_v27  ;;  %367 = vmatpush1.msra.mxu0 %v108_v28 }
  0x88   :  { %756 = vmatprep.subr.mxu1 %v969_v0  ;;  %368 = vmatprep.subr.mxu0 %v106_v29 }
  0x89   :  { %757 = vmatpush3.msra.mxu1 %v107_v30  ;;  %369 = vmatpush1.msra.mxu0 %v105_v31 }
  0x8a   :  { %758 = vmatprep.subr.mxu1 %v969_v0  ;;  %370 = vmatprep.subr.mxu0 %v103_v32 }
  0x8b   :  { %759 = vmatpush3.msra.mxu1 %v104_v33  ;;  %760 = vmatprep.mubr.msk.f32.mxu1 %vm970_vm0, %v969_v0 }
  0x8c   :  { %371 = vmatpush1.msra.mxu0 %v102_v34  ;;  %404 = vmatprep.mubr.f32.mxu0 %v969_v0  ;;  %v543_v0 = vrot.slane %v482_v41, %v1079_v38 }
  0x8d   :  { %761 = vmatmul.mubr.f32.vlgmr.msra.gmra.mxu1 %v1072_v35  ;;  %405 = vmatmul.mubr.f32.vlgmr.msra.gmra.mxu0 %v1072_v35 }
  0x8e   :  { %v558_v51 = vrot.slane %v543_v0, %v1079_v38 }
 0x12b   :  { %v265_v59 = vpop.f32.mrf.mxu0 }
 0x12c   :  { %v336_v55 = vpop.f32.mrf.mxu1 }
 0x12d   :  { %v267_v62 = vpop.f32.mrf.mxu0 }
 0x12e   :  { %v727_v56 = vpop.f32.mrf.mxu1 }
 0x14d   :  { %v477_v63 = vpop.f32.mrf.mxu1  ;;  %v406_v3 = vpop.f32.mrf.mxu0 }
 0x14e   :  { %v407_v4 = vadd.f32 %v406_v3, %v265_v59  ;;  %v478_v8 = vadd.f32 %v477_v63, %v336_v55 }
 0x14f   :  { %v762_v6 = vpop.f32.mrf.mxu1  ;;  %v408_v7 = vpop.f32.mrf.mxu0 }
 0x150   :  { %v513_v10 = vadd.f32 %v504_v2, %v407_v4  ;;  %v409_v11 = vadd.f32 %v408_v7, %v267_v62  ;;  %v515_v13 = vadd.f32 %v512_v9, %v478_v8 }
 0x152   :  { %v514_v12 = vadd.f32 %v508_v5, %v409_v11  ;;  %v521_v15 = vmul.f32 %v513_v10, %v513_v10  ;;  %v523_v19 = vmul.f32 %v515_v13, %v515_v13 }
 0x154   :  { %v516_v14 = vadd.f32 %v514_v12, %v513_v10  ;;  %v522_v16 = vmul.f32 %v514_v12, %v514_v12 }
 0x156   :  { %v517_v17 = vadd.f32 %v516_v14, %v515_v13  ;;  %v524_v18 = vadd.f32 %v522_v16, %v521_v15 }
 0x158   :  { %518 = vadd.xlane.f32.xlu0 %v517_v17  ;;  %v525_v20 = vadd.f32 %v524_v18, %v523_v19 }
 0x15c   :  { %526 = vadd.xlane.f32.xlu0 %v525_v20 }
 0x1e1   :  { %v519_v21 = vpop.xlane.xlu0 %518 }
 0x1e2   :  { %v520_v22 = vmul.f32 0.010416667, %v519_v21 }
 0x1e4   :  { %v529_v24 = vmul.f32 %v520_v22, %v520_v22  ;;  %v532_v29 = vsub.f32 %v513_v10, %v520_v22  ;;  %v533_v30 = vsub.f32 %v514_v12, %v520_v22  ;;  %v534_v31 = vsub.f32 %v515_v13, %v520_v22 }
 0x1e5   :  { %v527_v23 = vpop.xlane.xlu0 %526 }
 0x1e6   :  { %v528_v25 = vmul.f32 0.010416667, %v527_v23 }
 0x1e8   :  { %v530_v26 = vsub.f32 %v528_v25, %v529_v24 }
 0x1ea   :  { %v531_v27 = vmax.f32 %v530_v26, 0.0 }
 0x1ec   :  { %v535_v28 = vadd.f32 1e-06, %v531_v27 }
 0x1ee   :  { %775 = vrsqrt.f32 %v535_v28 }
 0x1fb   :  { %v776_v32 = vpop.eup %775 }
 0x1fc   :  { %v537_v33 = vmul.f32 %v776_v32, %v532_v29  ;;  %v538_v34 = vmul.f32 %v776_v32, %v533_v30  ;;  %v539_v36 = vmul.f32 %v776_v32, %v534_v31 }
 0x1fe   :  { %v567_v37 = vmul.f32 %v558_v51, %v537_v33  ;;  %v568_v38 = vmul.f32 %v562_v53, %v538_v34  ;;  %v569_v39 = vmul.f32 %v566_v49, %v539_v36  ;;  %v481_v51 = vld [vmem:[#allocation7] sm:$0xff] }
 0x200   :  { %v597_v40 = vadd.f32 %v588_v52, %v567_v37  ;;  %v598_v41 = vadd.f32 %v592_v54, %v568_v38  ;;  %v599_v42 = vadd.f32 %v596_v50, %v569_v39 }
 0x202   :  { %v656_v43 = vmul.f32 -1.442695, %v597_v40  ;;  %v657_v44 = vmul.f32 -1.442695, %v598_v41  ;;  %v658_v45 = vmul.f32 -1.442695, %v599_v42 }
 0x204   :  { %777 = vpow2.f32 %v656_v43 }
 0x205   :  { %779 = vpow2.f32 %v657_v44 }
 0x206   :  { %781 = vpow2.f32 %v658_v45 }
 0x211   :  { %v778_v0 = vpop.eup %777 }
 0x212   :  { %v780_v46 = vpop.eup %779  ;;  %v609_v47 = vadd.f32 1.0, %v778_v0 }
 0x213   :  { %v782_v48 = vpop.eup %781  ;;  %v610_v55 = vadd.f32 1.0, %v780_v46 }
 0x214   :  { %783 = vrcp.f32 %v609_v47  ;;  %v611_v56 = vadd.f32 1.0, %v782_v48 }
 0x215   :  { %785 = vrcp.f32 %v610_v55 }
 0x216   :  { %787 = vrcp.f32 %v611_v56 }
 0x221   :  { %v784_v49 = vpop.eup %783 }
 0x222   :  { %v786_v52 = vpop.eup %785  ;;  %v619_v50 = vmul.f32 %v784_v49, %v1072_v35 }
 0x223   :  { %v618_v53 = vmul.f32 %v786_v52, %v481_v51  ;;  %v788_v57 = vpop.eup %787 }
 0x225   :  { %v620_v54 = vadd.f32 %v619_v50, %v618_v53 }
 0x227   :  { %v621_v58 = vmul.f32 %v788_v57, %v620_v54  ;;  %622 = vst [vmem:[#allocation14] sm:$0xff] %v620_v54 }
 0x228   :  { %920 = shalt.err (!%p917_p6)
}
 0x229   :  { %643 = dma.vmem_to_hbm [thread:$0]  %s641_s5, 128, %s1107_s7, [#allocation15]   ;;  %623 = vst [vmem:[#allocation13] sm:$0xff] %v621_v58 }
 0x22a   :  { %s929_s11 = scalar_lea.vmem %s631_s30, 128  ;;  %p934_p8 = scmp.lt.s32.totalorder %s631_s30, %s631_s30 }
 0x22b   :  { %p930_p7 = scmp.ne.s32.totalorder %s631_s30, %s929_s11  ;;  %p935_p9 = scmp.lt.s32.totalorder %s929_s11, %s929_s11 }
 0x22d   :  { %p936_p10 = por %p935_p9, %p934_p8 }
 0x22f   :  { %p937_p11 = pnand %p936_p10, %p930_p7 }
 0x231   :  { %940 = shalt.err (!%p937_p11)
}
 0x232   :  { %633 = dma.vmem_to_hbm [thread:$0]  %s631_s30, 128, %s1106_s6, [#allocation4]  }
 0x233   :  { %957 = dma.done.wait [#allocation4], 128  }
 0x234   :  { %958 = vsyncadd [#allocation4], 4294967168 }
 0x235   :  { %959 = dma.done.wait [#allocation15], 128  }
 0x236   :  { %960 = vsyncadd [#allocation15], 4294967168 }
 0x237   :  { %650 = vsyncpa [#allocation3], 1 }
 0x238   :  { %651 = vsyncpa [#allocation6], 1 }
 0x239   :  { %652 = vsyncpa [#allocation9], 1 }
 0x23a   :  { %653 = vsyncpa [#allocation12], 1 }
 0x23b   :  { %654 = vsyncpa [#allocation4], 1 }
 0x23c   :  { %655 = vsyncpa [#allocation15], 1 }

</bundles_post_ra>
